<compile_context>
chip_gen: v7x
topology: tpu7x:2x2x1
jax: 0.10.0
libtpu: 0.0.40
codegen_flags: <defaults>
</compile_context>

<pallas_src>
import functools
import math

import jax
import jax.numpy as jnp
from jax.experimental import pallas as pl
from jax.experimental.pallas import tpu as pltpu

SELU_ALPHA = 1.6732632423543772
SELU_SCALE = 1.0507009873554805
BN_EPS = 1e-5

_MAX_TILE_ROWS = 4096  # review: 2048-4096 rows amortize per-step overhead


def _round_up(x, m):
    return (x + m - 1) // m * m


def _selu(v):
    return SELU_SCALE * jnp.where(v > 0.0, v, SELU_ALPHA * (jnp.exp(v) - 1.0))


def _vmem_capacity_bytes():
    """Per-core VMEM capacity; conservative fallback = v7x (64 MiB/TC)."""
    try:
        return int(pltpu.get_tpu_info().vmem_capacity_bytes)
    except Exception:
        return 64 * 1024 * 1024


def _choose_tile(rows, D0, D1, D2):
    """Generation-aware row tile + scoped-VMEM limit."""
    # Double-buffered streaming bytes per row for the worst stage:
    #   s1: x bf16 + mask i8 + h1 bf16 | s2: h1 bf16 + h2 bf16 | s3: h2 bf16 + out f32
    per_row = max(2 * (2 * D0 + D0 + 2 * D1),
                  2 * (2 * D1 + 2 * D2),
                  2 * (2 * D2 + 4 * D0))
    # VMEM-resident operands of the worst stage (bf16 weights + f32 bias), x2 buffers.
    resident = 2 * (2 * max(D0 * D1, D1 * D2, D2 * D0) + 4 * max(D0, D1, D2))
    cap = _vmem_capacity_bytes()                   # 128 MiB v5e/v6e, 64 MiB/TC v7x
    vmem_limit = min(cap // 2, 48 * 1024 * 1024)   # scoped budget we request
    budget = (3 * vmem_limit) // 4 - resident      # headroom for scratch/metadata
    tile_cap = max(32, min(_MAX_TILE_ROWS, (budget // max(per_row, 1)) // 32 * 32))
    if rows <= 32:
        tile = _round_up(rows, 8)                  # one tile == full padded row extent
    else:
        # Keep >= 2 grid steps so the "parallel" row axis shards over both v7x cores;
        # multiples of 32 keep int8/bf16 sublane packing aligned when ntiles > 1.
        tile = min(tile_cap, _round_up(-(-rows // 2), 32))
    return tile, vmem_limit


# ----------------------------- kernels ------------------------------------- #

def _partial_stats(h, rows, tile, dim):
    """Pack per-tile [sum; sum_of_squares] over VALID rows into an (8, dim) slab."""
    base = pl.program_id(0) * tile
    rid = jax.lax.broadcasted_iota(jnp.int32, (tile, 1), 0) + base
    valid = (rid < rows).astype(jnp.float32)                # exclude padded rows
    hv = h * valid
    psum = jnp.sum(hv, axis=0, keepdims=True)               # (1, dim)
    psq = jnp.sum(hv * h, axis=0, keepdims=True)            # (1, dim) = sum(valid*h^2)
    ridx = jax.lax.broadcasted_iota(jnp.int32, (8, dim), 0)
    return jnp.where(ridx == 0, psum, jnp.where(ridx == 1, psq, 0.0))


def _front_kernel(x_ref, m_ref, emb_ref, w_ref, b_ref, h_ref, stats_ref, *, rows, tile):
    """mask select + fused embedding add + Linear(16T->12T) + SELU + BN1 partials."""
    mb = m_ref[...] != 0                                    # int8 compare, no widen
    # mask==1: x + (valid0+valid1); mask==0: (missing0+missing1)  (0/1 indicator mask)
    h = jnp.where(mb, x_ref[...].astype(jnp.float32) + emb_ref[0], emb_ref[1])
    h = jnp.dot(h.astype(jnp.bfloat16), w_ref[...],
                preferred_element_type=jnp.float32) + b_ref[...]
    h = _selu(h)                                            # f32
    stats_ref[...] = _partial_stats(h, rows, tile, h.shape[1])[None]
    h_ref[...] = h.astype(jnp.bfloat16)


def _mid_kernel(h_ref, w_ref, b_ref, o_ref, stats_ref, *, rows, tile):
    """Linear (BN folded into w/b) + SELU + BN partials for the next stage."""
    h = jnp.dot(h_ref[...], w_ref[...], preferred_element_type=jnp.float32) + b_ref[...]
    h = _selu(h)
    stats_ref[...] = _partial_stats(h, rows, tile, h.shape[1])[None]
    o_ref[...] = h.astype(jnp.bfloat16)


def _last_kernel(h_ref, w_ref, b_ref, o_ref):
    """Final Linear (BN folded into w/b), f32 output."""
    o_ref[...] = jnp.dot(h_ref[...], w_ref[...],
                         preferred_element_type=jnp.float32) + b_ref[...]


# ----------------------------- wrapper -------------------------------------- #

def _finalize_bn(stats, rows, gamma, beta, w_next, b_next):
    """Reduce per-tile partials -> batch mean/var, fold BN into the next Linear."""
    s = jnp.sum(stats[:, 0, :], axis=0)
    q = jnp.sum(stats[:, 1, :], axis=0)
    mean = (s / rows)[None, :]
    # E[x^2] - mean^2 in f32; clamp for cancellation safety (values are O(1)).
    var = jnp.maximum(q[None, :] / rows - mean * mean, 0.0)
    scale = gamma * jax.lax.rsqrt(var + BN_EPS)             # (1, D)
    shift = beta - mean * scale                             # (1, D)
    # (h*scale + shift) @ W + b  ==  h @ (diag(scale) @ W) + (shift @ W + b)
    w_folded = (w_next * scale.reshape(-1, 1)).astype(jnp.bfloat16)
    b_folded = b_next + shift @ w_next                      # f32
    return w_folded, b_folded


def mtst_forward(x, mask, params):
    """x, mask: (B, L, n) float32 with L = 16*window; mask is a 0/1 indicator."""
    B, L, n = x.shape
    rows = B * n
    D0 = L
    D1 = params["w1"].shape[1]
    D2 = params["w2"].shape[1]

    # Single fused layout transform per array, identical to
    # x.permute(1,0,2).flatten(1).permute(1,0): row b*n+j <- x[b, :, j].
    x_rows = jnp.transpose(x, (0, 2, 1)).reshape(rows, L).astype(jnp.bfloat16)
    m_rows = jnp.transpose((mask != 0).astype(jnp.int8), (0, 2, 1)).reshape(rows, L)

    tile, vmem_limit = _choose_tile(rows, D0, D1, D2)
    rows_p = _round_up(rows, tile)
    if rows_p != rows:
        pad = rows_p - rows
        x_rows = jnp.pad(x_rows, ((0, pad), (0, 0)))
        m_rows = jnp.pad(m_rows, ((0, pad), (0, 0)))
    ntiles = rows_p // tile

    # Fused embedding scalars (valid0+valid1, missing0+missing1) -> SMEM.
    emb = params["emb"]
    emb2 = jnp.stack([emb[0] + emb[2], emb[1] + emb[3]])    # (2,) f32

    cparams = pltpu.CompilerParams(
        dimension_semantics=("parallel",),
        vmem_limit_bytes=vmem_limit,
    )
    smem_full = pl.BlockSpec(memory_space=pltpu.MemorySpace.SMEM)

    w1 = params["w1"].astype(jnp.bfloat16)

    # --- stage 1: mask + embed + Linear1 + SELU + BN1 partials -----------------
    h1, st1 = pl.pallas_call(
        functools.partial(_front_kernel, rows=rows, tile=tile),
        out_shape=(jax.ShapeDtypeStruct((rows_p, D1), jnp.bfloat16),
                   jax.ShapeDtypeStruct((ntiles, 8, D1), jnp.float32)),
        grid=(ntiles,),
        in_specs=[
            pl.BlockSpec((tile, D0), lambda i: (i, 0)),      # x rows (bf16)
            pl.BlockSpec((tile, D0), lambda i: (i, 0)),      # mask rows (int8)
            smem_full,                                       # fused emb scalars
            pl.BlockSpec((D0, D1), lambda i: (0, 0)),        # w1 (resident, bf16)
            pl.BlockSpec((1, D1), lambda i: (0, 0)),         # b1 (resident, f32)
        ],
        out_specs=(pl.BlockSpec((tile, D1), lambda i: (i, 0)),
                   pl.BlockSpec((1, 8, D1), lambda i: (i, 0, 0))),
        compiler_params=cparams,
        cost_estimate=pl.CostEstimate(
            flops=2 * rows_p * D0 * D1,
            transcendentals=rows_p * D1,
            bytes_accessed=rows_p * (3 * D0 + 2 * D1) + 2 * D0 * D1 + 4 * D1),
    )(x_rows, m_rows, emb2, w1, params["b1"])

    # BN1 (training-mode, full-batch stats) folded into Linear2's weights/bias.
    w2f, b2f = _finalize_bn(st1, rows, params["g1"], params["be1"],
                            params["w2"], params["b2"])

    # --- stage 2: (BN1∘)Linear2 + SELU + BN2 partials ---------------------------
    h2, st2 = pl.pallas_call(
        functools.partial(_mid_kernel, rows=rows, tile=tile),
        out_shape=(jax.ShapeDtypeStruct((rows_p, D2), jnp.bfloat16),
                   jax.ShapeDtypeStruct((ntiles, 8, D2), jnp.float32)),
        grid=(ntiles,),
        in_specs=[
            pl.BlockSpec((tile, D1), lambda i: (i, 0)),      # h1 rows (bf16)
            pl.BlockSpec((D1, D2), lambda i: (0, 0)),        # w2 folded (bf16)
            pl.BlockSpec((1, D2), lambda i: (0, 0)),         # b2 folded (f32)
        ],
        out_specs=(pl.BlockSpec((tile, D2), lambda i: (i, 0)),
                   pl.BlockSpec((1, 8, D2), lambda i: (i, 0, 0))),
        compiler_params=cparams,
        cost_estimate=pl.CostEstimate(
            flops=2 * rows_p * D1 * D2,
            transcendentals=rows_p * D2,
            bytes_accessed=rows_p * 2 * (D1 + D2) + 2 * D1 * D2 + 4 * D2),
    )(h1, w2f, b2f)

    # BN2 folded into Linear3's weights/bias.
    w3f, b3f = _finalize_bn(st2, rows, params["g2"], params["be2"],
                            params["w3"], params["b3"])

    # --- stage 3: (BN2∘)Linear3 -------------------------------------------------
    out_rows = pl.pallas_call(
        _last_kernel,
        out_shape=jax.ShapeDtypeStruct((rows_p, D0), jnp.float32),
        grid=(ntiles,),
        in_specs=[
            pl.BlockSpec((tile, D2), lambda i: (i, 0)),      # h2 rows (bf16)
            pl.BlockSpec((D2, D0), lambda i: (0, 0)),        # w3 folded (bf16)
            pl.BlockSpec((1, D0), lambda i: (0, 0)),         # b3 folded (f32)
        ],
        out_specs=pl.BlockSpec((tile, D0), lambda i: (i, 0)),
        compiler_params=cparams,
        cost_estimate=pl.CostEstimate(
            flops=2 * rows_p * D2 * D0,
            transcendentals=0,
            bytes_accessed=rows_p * (2 * D2 + 4 * D0) + 2 * D2 * D0 + 4 * D0),
    )(h2, w3f, b3f)

    # (rows, D0) -> (B, n, D0) -> (B, D0, n) -> (B, D0, n, 1)
    out = out_rows[:rows]
    return jnp.transpose(out.reshape(B, n, D0), (0, 2, 1))[..., None]


# ----------------------------- params & reference --------------------------- #

def make_params(key, window, multipliers=(16, 12, 8)):
    T = window
    D0, D1, D2 = multipliers[0] * T, multipliers[1] * T, multipliers[2] * T
    ks = jax.random.split(key, 6)

    def xavier(k, fan_in, fan_out):
        bound = math.sqrt(6.0 / (fan_in + fan_out))
        return jax.random.uniform(k, (fan_in, fan_out), jnp.float32, -bound, bound)

    valid_emb = jax.random.normal(ks[0], (2,), jnp.float32)    # valid_emb[:, 0]
    missing_emb = jax.random.normal(ks[1], (2,), jnp.float32)  # missing_emb[:, 0]
    # packed order: [valid0, missing0, valid1, missing1]
    emb = jnp.array([valid_emb[0], missing_emb[0], valid_emb[1], missing_emb[1]],
                    dtype=jnp.float32)

    return dict(
        emb=emb,
        w1=xavier(ks[2], D0, D1), b1=jnp.zeros((1, D1), jnp.float32),
        g1=jnp.ones((1, D1), jnp.float32), be1=jnp.zeros((1, D1), jnp.float32),
        w2=xavier(ks[3], D1, D2), b2=jnp.zeros((1, D2), jnp.float32),
        g2=jnp.ones((1, D2), jnp.float32), be2=jnp.zeros((1, D2), jnp.float32),
        w3=xavier(ks[4], D2, D0), b3=jnp.zeros((1, D0), jnp.float32),
    )


def mtst_reference(x, mask, params):
    """Pure-JAX f32 reference mirroring the PyTorch forward (correctness check)."""
    B, L, n = x.shape
    rows = B * n
    h = jnp.transpose(x, (0, 2, 1)).reshape(rows, L)
    m = jnp.transpose(mask, (0, 2, 1)).reshape(rows, L)
    mb = m != 0
    emb = params["emb"]
    h = h * m
    h = jnp.where(mb, h + emb[0], h + emb[1])
    h = jnp.where(mb, h + emb[2], h + emb[3])

    def bn(v, g, b):
        mu = jnp.mean(v, axis=0, keepdims=True)
        var = jnp.mean((v - mu) ** 2, axis=0, keepdims=True)
        return (v - mu) * jax.lax.rsqrt(var + BN_EPS) * g + b

    h = bn(_selu(h @ params["w1"] + params["b1"]), params["g1"], params["be1"])
    h = bn(_selu(h @ params["w2"] + params["b2"]), params["g2"], params["be2"])
    h = h @ params["w3"] + params["b3"]
    return jnp.transpose(h.reshape(B, n, L), (0, 2, 1))[..., None]


if __name__ == "__main__":
    window = 8
    multipliers = (16, 12, 8)
    B, n = 4, 8                      # rows = B*n = 32
    L = multipliers[0] * window      # 128

    key = jax.random.PRNGKey(0)
    kx, km, kp = jax.random.split(key, 3)

    # inputs mirroring the PyTorch call: x, mask arrive as (B, L, n, 1), then squeeze
    x4 = jax.random.normal(kx, (B, L, n, 1), jnp.float32)
    mask4 = (jax.random.uniform(km, (B, L, n, 1)) > 0.3).astype(jnp.float32)
    x = jnp.squeeze(x4, axis=-1)
    mask = jnp.squeeze(mask4, axis=-1)

    params = make_params(kp, window, multipliers)

    out = jax.jit(mtst_forward)(x, mask, params)
    out = jax.block_until_ready(out)

    ref = mtst_reference(x, mask, params)
    assert out.shape == (B, L, n, 1), out.shape
    # bf16 activation/weight storage + small-batch BatchNorm (stats over B*n rows)
    # set the tolerance; matmul accumulation / SELU / BN stats all stay f32.
    max_err = float(jnp.max(jnp.abs(out - ref)))
    assert jnp.allclose(out, ref, atol=5e-2, rtol=5e-2), f"max |err| = {max_err}"

    print("KERNEL_OK")
</pallas_src>

<mosaic_0001>
module attributes {stable_mosaic.version = 11 : i64} {
  func.func @_last_kernel(%arg0: i32, %arg1: memref<32x64xbf16, #tpu.memory_space<vmem>>, %arg2: memref<64x128xbf16, #tpu.memory_space<vmem>>, %arg3: memref<1x128xf32, #tpu.memory_space<vmem>>, %arg4: memref<32x128xf32, #tpu.memory_space<vmem>>) attributes {dimension_semantics = [#tpu.dimension_semantics<parallel>], iteration_bounds = array<i64: 1>, scalar_prefetch = 0 : i64, scratch_operands = 0 : i64, tpu.core_type = #tpu.core_type<tc>, window_params = [{transform_indices = @transform_0, window_bounds = array<i64: 32, 64>}, {pipeline_mode = #tpu.pipeline_mode<synchronous>, transform_indices = @transform_1, window_bounds = array<i64: 64, 128>}, {pipeline_mode = #tpu.pipeline_mode<synchronous>, transform_indices = @transform_2, window_bounds = array<i64: 1, 128>}, {transform_indices = @transform_3, window_bounds = array<i64: 32, 128>}]} {
    %c0 = arith.constant 0 : index
    %c0_0 = arith.constant 0 : index
    %0 = vector.load %arg1[%c0, %c0_0] : memref<32x64xbf16, #tpu.memory_space<vmem>>, vector<32x64xbf16>
    %c0_1 = arith.constant 0 : index
    %c0_2 = arith.constant 0 : index
    %1 = vector.load %arg2[%c0_1, %c0_2] : memref<64x128xbf16, #tpu.memory_space<vmem>>, vector<64x128xbf16>
    %cst = arith.constant dense<0.000000e+00> : vector<32x128xf32>
    %2 = tpu.matmul %0, %1, %cst {dimension_numbers = #tpu.dot_dimension_numbers<[1], [0], [0], [1], [0, 0, 1, 1], [], []>} : vector<32x64xbf16>, vector<64x128xbf16>, vector<32x128xf32> -> vector<32x128xf32>
    %c0_3 = arith.constant 0 : index
    %c0_4 = arith.constant 0 : index
    %3 = vector.load %arg3[%c0_3, %c0_4] : memref<1x128xf32, #tpu.memory_space<vmem>>, vector<1x128xf32>
    %4 = vector.broadcast %3 : vector<1x128xf32> to vector<32x128xf32>
    %5 = arith.addf %2, %4 : vector<32x128xf32>
    %c0_5 = arith.constant 0 : index
    %c0_6 = arith.constant 0 : index
    %6 = vector.load %arg4[%c0_5, %c0_6] : memref<32x128xf32, #tpu.memory_space<vmem>>, vector<32x128xf32>
    tpu.vector_store %arg4[%c0_5, %c0_6], %5 {strides = array<i32>} : memref<32x128xf32, #tpu.memory_space<vmem>>, vector<32x128xf32>,
    return
  }
  func.func @transform_0(%arg0: i32) -> (i32, i32) {
    %c0_i32 = arith.constant 0 : i32
    %c0_i32_0 = arith.constant 0 : i32
    return %arg0, %c0_i32 : i32, i32
  }
  func.func @transform_1(%arg0: i32) -> (i32, i32) {
    %c0_i32 = arith.constant 0 : i32
    %c0_i32_0 = arith.constant 0 : i32
    %c0_i32_1 = arith.constant 0 : i32
    return %c0_i32, %c0_i32_0 : i32, i32
  }
  func.func @transform_2(%arg0: i32) -> (i32, i32) {
    %c0_i32 = arith.constant 0 : i32
    %c0_i32_0 = arith.constant 0 : i32
    %c0_i32_1 = arith.constant 0 : i32
    return %c0_i32, %c0_i32_0 : i32, i32
  }
  func.func @transform_3(%arg0: i32) -> (i32, i32) {
    %c0_i32 = arith.constant 0 : i32
    %c0_i32_0 = arith.constant 0 : i32
    return %arg0, %c0_i32 : i32, i32
  }
}

module attributes {stable_mosaic.version = 11 : i64} {
  func.func @_front_kernel(%arg0: i32, %arg1: memref<32x128xbf16, #tpu.memory_space<vmem>>, %arg2: memref<32x128xi8, #tpu.memory_space<vmem>>, %arg3: memref<2xf32, #tpu.memory_space<smem>>, %arg4: memref<128x96xbf16, #tpu.memory_space<vmem>>, %arg5: memref<1x96xf32, #tpu.memory_space<vmem>>, %arg6: memref<32x96xbf16, #tpu.memory_space<vmem>>, %arg7: memref<1x8x96xf32, #tpu.memory_space<vmem>>) attributes {dimension_semantics = [#tpu.dimension_semantics<parallel>], iteration_bounds = array<i64: 1>, scalar_prefetch = 0 : i64, scratch_operands = 0 : i64, tpu.core_type = #tpu.core_type<tc>, window_params = [{transform_indices = @transform_0, window_bounds = array<i64: 32, 128>}, {transform_indices = @transform_1, window_bounds = array<i64: 32, 128>}, {transform_indices = @transform_2, window_bounds = array<i64: 2>}, {pipeline_mode = #tpu.pipeline_mode<synchronous>, transform_indices = @transform_3, window_bounds = array<i64: 128, 96>}, {pipeline_mode = #tpu.pipeline_mode<synchronous>, transform_indices = @transform_4, window_bounds = array<i64: 1, 96>}, {transform_indices = @transform_5, window_bounds = array<i64: 32, 96>}, {transform_indices = @transform_6, window_bounds = array<i64: 1, 8, 96>}]} {
    %c0 = arith.constant 0 : index
    %c0_0 = arith.constant 0 : index
    %0 = vector.load %arg2[%c0, %c0_0] : memref<32x128xi8, #tpu.memory_space<vmem>>, vector<32x128xi8>
    %c0_i8 = arith.constant 0 : i8
    %1 = vector.broadcast %c0_i8 : i8 to vector<32x128xi8>
    %2 = arith.cmpi ne, %0, %1 : vector<32x128xi8>
    %c0_1 = arith.constant 0 : index
    %c0_2 = arith.constant 0 : index
    %3 = vector.load %arg1[%c0_1, %c0_2] : memref<32x128xbf16, #tpu.memory_space<vmem>>, vector<32x128xbf16>
    %4 = arith.extf %3 : vector<32x128xbf16> to vector<32x128xf32>
    %c0_3 = arith.constant 0 : index
    %5 = memref.load %arg3[%c0_3] : memref<2xf32, #tpu.memory_space<smem>>
    %6 = vector.broadcast %5 : f32 to vector<32x128xf32>
    %7 = arith.addf %4, %6 : vector<32x128xf32>
    %c1 = arith.constant 1 : index
    %8 = memref.load %arg3[%c1] : memref<2xf32, #tpu.memory_space<smem>>
    %9 = vector.broadcast %8 : f32 to vector<32x128xf32>
    %10 = arith.select %2, %7, %9 : vector<32x128xi1>, vector<32x128xf32>
    %11 = arith.truncf %10 : vector<32x128xf32> to vector<32x128xbf16>
    %c0_4 = arith.constant 0 : index
    %c0_5 = arith.constant 0 : index
    %12 = vector.load %arg4[%c0_4, %c0_5] : memref<128x96xbf16, #tpu.memory_space<vmem>>, vector<128x96xbf16>
    %cst = arith.constant dense<0.000000e+00> : vector<32x96xf32>
    %13 = tpu.matmul %11, %12, %cst {dimension_numbers = #tpu.dot_dimension_numbers<[1], [0], [0], [1], [0, 0, 1, 1], [], []>} : vector<32x128xbf16>, vector<128x96xbf16>, vector<32x96xf32> -> vector<32x96xf32>
    %c0_6 = arith.constant 0 : index
    %c0_7 = arith.constant 0 : index
    %14 = vector.load %arg5[%c0_6, %c0_7] : memref<1x96xf32, #tpu.memory_space<vmem>>, vector<1x96xf32>
    %15 = vector.broadcast %14 : vector<1x96xf32> to vector<32x96xf32>
    %16 = arith.addf %13, %15 : vector<32x96xf32>
    %cst_8 = arith.constant 0.000000e+00 : f32
    %17 = vector.broadcast %cst_8 : f32 to vector<32x96xf32>
    %18 = arith.cmpf ogt, %16, %17 : vector<32x96xf32>
    %19 = math.exp %16 : vector<32x96xf32>
    %cst_9 = arith.constant 1.000000e+00 : f32
    %20 = vector.broadcast %cst_9 : f32 to vector<32x96xf32>
    %21 = arith.subf %19, %20 : vector<32x96xf32>
    %cst_10 = arith.constant 1.67326319 : f32
    %22 = vector.broadcast %cst_10 : f32 to vector<32x96xf32>
    %23 = arith.mulf %22, %21 : vector<32x96xf32>
    %24 = arith.select %18, %16, %23 : vector<32x96xi1>, vector<32x96xf32>
    %cst_11 = arith.constant 1.05070102 : f32
    %25 = vector.broadcast %cst_11 : f32 to vector<32x96xf32>
    %26 = arith.mulf %25, %24 : vector<32x96xf32>
    %c32_i32 = arith.constant 32 : i32
    %27 = arith.muli %arg0, %c32_i32 : i32
    %28 = tpu.iota {dimensions = array<i32: 0>} : vector<32x1xi32>
    %29 = vector.broadcast %27 : i32 to vector<32x1xi32>
    %30 = arith.addi %28, %29 : vector<32x1xi32>
    %c32_i32_12 = arith.constant 32 : i32
    %31 = vector.broadcast %c32_i32_12 : i32 to vector<32x1xi32>
    %32 = arith.cmpi slt, %30, %31 : vector<32x1xi32>
    %33 = arith.extui %32 : vector<32x1xi1> to vector<32x1xi32>
    %34 = arith.sitofp %33 : vector<32x1xi32> to vector<32x1xf32>
    %35 = vector.broadcast %34 : vector<32x1xf32> to vector<32x96xf32>
    %36 = arith.mulf %26, %35 : vector<32x96xf32>
    %cst_13 = arith.constant dense<0.000000e+00> : vector<96xf32>
    %37 = vector.multi_reduction <add>, %36, %cst_13 [0] : vector<32x96xf32> to vector<96xf32>
    %38 = vector.shape_cast %37 : vector<96xf32> to vector<1x96xf32>
    %39 = arith.mulf %36, %26 : vector<32x96xf32>
    %cst_14 = arith.constant dense<0.000000e+00> : vector<96xf32>
    %40 = vector.multi_reduction <add>, %39, %cst_14 [0] : vector<32x96xf32> to vector<96xf32>
    %41 = vector.shape_cast %40 : vector<96xf32> to vector<1x96xf32>
    %42 = tpu.iota {dimensions = array<i32: 0>} : vector<8x96xi32>
    %c0_i32 = arith.constant 0 : i32
    %43 = vector.broadcast %c0_i32 : i32 to vector<8x96xi32>
    %44 = arith.cmpi eq, %42, %43 : vector<8x96xi32>
    %c1_i32 = arith.constant 1 : i32
    %45 = vector.broadcast %c1_i32 : i32 to vector<8x96xi32>
    %46 = arith.cmpi eq, %42, %45 : vector<8x96xi32>
    %cst_15 = arith.constant 0.000000e+00 : f32
    %47 = vector.shape_cast %41 : vector<1x96xf32> to vector<1x96xf32>
    %48 = vector.broadcast %47 : vector<1x96xf32> to vector<8x96xf32>
    %49 = vector.broadcast %cst_15 : f32 to vector<8x96xf32>
    %50 = arith.select %46, %48, %49 : vector<8x96xi1>, vector<8x96xf32>
    %51 = vector.shape_cast %38 : vector<1x96xf32> to vector<1x96xf32>
    %52 = vector.broadcast %51 : vector<1x96xf32> to vector<8x96xf32>
    %53 = arith.select %44, %52, %50 : vector<8x96xi1>, vector<8x96xf32>
    %54 = vector.shape_cast %53 : vector<8x96xf32> to vector<1x8x96xf32>
    %c0_16 = arith.constant 0 : index
    %c0_17 = arith.constant 0 : index
    %c0_18 = arith.constant 0 : index
    %55 = vector.load %arg7[%c0_16, %c0_17, %c0_18] : memref<1x8x96xf32, #tpu.memory_space<vmem>>, vector<1x8x96xf32>
    tpu.vector_store %arg7[%c0_16, %c0_17, %c0_18], %54 {strides = array<i32>} : memref<1x8x96xf32, #tpu.memory_space<vmem>>, vector<1x8x96xf32>,
    %56 = arith.truncf %26 : vector<32x96xf32> to vector<32x96xbf16>
    %c0_19 = arith.constant 0 : index
    %c0_20 = arith.constant 0 : index
    %57 = vector.load %arg6[%c0_19, %c0_20] : memref<32x96xbf16, #tpu.memory_space<vmem>>, vector<32x96xbf16>
    tpu.vector_store %arg6[%c0_19, %c0_20], %56 {strides = array<i32>} : memref<32x96xbf16, #tpu.memory_space<vmem>>, vector<32x96xbf16>,
    return
  }
  func.func @transform_0(%arg0: i32) -> (i32, i32) {
    %c0_i32 = arith.constant 0 : i32
    %c0_i32_0 = arith.constant 0 : i32
    return %arg0, %c0_i32 : i32, i32
  }
  func.func @transform_1(%arg0: i32) -> (i32, i32) {
    %c0_i32 = arith.constant 0 : i32
    %c0_i32_0 = arith.constant 0 : i32
    return %arg0, %c0_i32 : i32, i32
  }
  func.func @transform_2(%arg0: i32) -> i32 {
    %c0_i32 = arith.constant 0 : i32
    %c0_i32_0 = arith.constant 0 : i32
    return %c0_i32 : i32
  }
  func.func @transform_3(%arg0: i32) -> (i32, i32) {
    %c0_i32 = arith.constant 0 : i32
    %c0_i32_0 = arith.constant 0 : i32
    %c0_i32_1 = arith.constant 0 : i32
    return %c0_i32, %c0_i32_0 : i32, i32
  }
  func.func @transform_4(%arg0: i32) -> (i32, i32) {
    %c0_i32 = arith.constant 0 : i32
    %c0_i32_0 = arith.constant 0 : i32
    %c0_i32_1 = arith.constant 0 : i32
    return %c0_i32, %c0_i32_0 : i32, i32
  }
  func.func @transform_5(%arg0: i32) -> (i32, i32) {
    %c0_i32 = arith.constant 0 : i32
    %c0_i32_0 = arith.constant 0 : i32
    return %arg0, %c0_i32 : i32, i32
  }
  func.func @transform_6(%arg0: i32) -> (i32, i32, i32) {
    %c0_i32 = arith.constant 0 : i32
    %c0_i32_0 = arith.constant 0 : i32
    %c0_i32_1 = arith.constant 0 : i32
    return %arg0, %c0_i32, %c0_i32_0 : i32, i32, i32
  }
}

module attributes {stable_mosaic.version = 11 : i64} {
  func.func @_mid_kernel(%arg0: i32, %arg1: memref<32x96xbf16, #tpu.memory_space<vmem>>, %arg2: memref<96x64xbf16, #tpu.memory_space<vmem>>, %arg3: memref<1x64xf32, #tpu.memory_space<vmem>>, %arg4: memref<32x64xbf16, #tpu.memory_space<vmem>>, %arg5: memref<1x8x64xf32, #tpu.memory_space<vmem>>) attributes {dimension_semantics = [#tpu.dimension_semantics<parallel>], iteration_bounds = array<i64: 1>, scalar_prefetch = 0 : i64, scratch_operands = 0 : i64, tpu.core_type = #tpu.core_type<tc>, window_params = [{transform_indices = @transform_0, window_bounds = array<i64: 32, 96>}, {pipeline_mode = #tpu.pipeline_mode<synchronous>, transform_indices = @transform_1, window_bounds = array<i64: 96, 64>}, {pipeline_mode = #tpu.pipeline_mode<synchronous>, transform_indices = @transform_2, window_bounds = array<i64: 1, 64>}, {transform_indices = @transform_3, window_bounds = array<i64: 32, 64>}, {transform_indices = @transform_4, window_bounds = array<i64: 1, 8, 64>}]} {
    %c0 = arith.constant 0 : index
    %c0_0 = arith.constant 0 : index
    %0 = vector.load %arg1[%c0, %c0_0] : memref<32x96xbf16, #tpu.memory_space<vmem>>, vector<32x96xbf16>
    %c0_1 = arith.constant 0 : index
    %c0_2 = arith.constant 0 : index
    %1 = vector.load %arg2[%c0_1, %c0_2] : memref<96x64xbf16, #tpu.memory_space<vmem>>, vector<96x64xbf16>
    %cst = arith.constant dense<0.000000e+00> : vector<32x64xf32>
    %2 = tpu.matmul %0, %1, %cst {dimension_numbers = #tpu.dot_dimension_numbers<[1], [0], [0], [1], [0, 0, 1, 1], [], []>} : vector<32x96xbf16>, vector<96x64xbf16>, vector<32x64xf32> -> vector<32x64xf32>
    %c0_3 = arith.constant 0 : index
    %c0_4 = arith.constant 0 : index
    %3 = vector.load %arg3[%c0_3, %c0_4] : memref<1x64xf32, #tpu.memory_space<vmem>>, vector<1x64xf32>
    %4 = vector.broadcast %3 : vector<1x64xf32> to vector<32x64xf32>
    %5 = arith.addf %2, %4 : vector<32x64xf32>
    %cst_5 = arith.constant 0.000000e+00 : f32
    %6 = vector.broadcast %cst_5 : f32 to vector<32x64xf32>
    %7 = arith.cmpf ogt, %5, %6 : vector<32x64xf32>
    %8 = math.exp %5 : vector<32x64xf32>
    %cst_6 = arith.constant 1.000000e+00 : f32
    %9 = vector.broadcast %cst_6 : f32 to vector<32x64xf32>
    %10 = arith.subf %8, %9 : vector<32x64xf32>
    %cst_7 = arith.constant 1.67326319 : f32
    %11 = vector.broadcast %cst_7 : f32 to vector<32x64xf32>
    %12 = arith.mulf %11, %10 : vector<32x64xf32>
    %13 = arith.select %7, %5, %12 : vector<32x64xi1>, vector<32x64xf32>
    %cst_8 = arith.constant 1.05070102 : f32
    %14 = vector.broadcast %cst_8 : f32 to vector<32x64xf32>
    %15 = arith.mulf %14, %13 : vector<32x64xf32>
    %c32_i32 = arith.constant 32 : i32
    %16 = arith.muli %arg0, %c32_i32 : i32
    %17 = tpu.iota {dimensions = array<i32: 0>} : vector<32x1xi32>
    %18 = vector.broadcast %16 : i32 to vector<32x1xi32>
    %19 = arith.addi %17, %18 : vector<32x1xi32>
    %c32_i32_9 = arith.constant 32 : i32
    %20 = vector.broadcast %c32_i32_9 : i32 to vector<32x1xi32>
    %21 = arith.cmpi slt, %19, %20 : vector<32x1xi32>
    %22 = arith.extui %21 : vector<32x1xi1> to vector<32x1xi32>
    %23 = arith.sitofp %22 : vector<32x1xi32> to vector<32x1xf32>
    %24 = vector.broadcast %23 : vector<32x1xf32> to vector<32x64xf32>
    %25 = arith.mulf %15, %24 : vector<32x64xf32>
    %cst_10 = arith.constant dense<0.000000e+00> : vector<64xf32>
    %26 = vector.multi_reduction <add>, %25, %cst_10 [0] : vector<32x64xf32> to vector<64xf32>
    %27 = vector.shape_cast %26 : vector<64xf32> to vector<1x64xf32>
    %28 = arith.mulf %25, %15 : vector<32x64xf32>
    %cst_11 = arith.constant dense<0.000000e+00> : vector<64xf32>
    %29 = vector.multi_reduction <add>, %28, %cst_11 [0] : vector<32x64xf32> to vector<64xf32>
    %30 = vector.shape_cast %29 : vector<64xf32> to vector<1x64xf32>
    %31 = tpu.iota {dimensions = array<i32: 0>} : vector<8x64xi32>
    %c0_i32 = arith.constant 0 : i32
    %32 = vector.broadcast %c0_i32 : i32 to vector<8x64xi32>
    %33 = arith.cmpi eq, %31, %32 : vector<8x64xi32>
    %c1_i32 = arith.constant 1 : i32
    %34 = vector.broadcast %c1_i32 : i32 to vector<8x64xi32>
    %35 = arith.cmpi eq, %31, %34 : vector<8x64xi32>
    %cst_12 = arith.constant 0.000000e+00 : f32
    %36 = vector.shape_cast %30 : vector<1x64xf32> to vector<1x64xf32>
    %37 = vector.broadcast %36 : vector<1x64xf32> to vector<8x64xf32>
    %38 = vector.broadcast %cst_12 : f32 to vector<8x64xf32>
    %39 = arith.select %35, %37, %38 : vector<8x64xi1>, vector<8x64xf32>
    %40 = vector.shape_cast %27 : vector<1x64xf32> to vector<1x64xf32>
    %41 = vector.broadcast %40 : vector<1x64xf32> to vector<8x64xf32>
    %42 = arith.select %33, %41, %39 : vector<8x64xi1>, vector<8x64xf32>
    %43 = vector.shape_cast %42 : vector<8x64xf32> to vector<1x8x64xf32>
    %c0_13 = arith.constant 0 : index
    %c0_14 = arith.constant 0 : index
    %c0_15 = arith.constant 0 : index
    %44 = vector.load %arg5[%c0_13, %c0_14, %c0_15] : memref<1x8x64xf32, #tpu.memory_space<vmem>>, vector<1x8x64xf32>
    tpu.vector_store %arg5[%c0_13, %c0_14, %c0_15], %43 {strides = array<i32>} : memref<1x8x64xf32, #tpu.memory_space<vmem>>, vector<1x8x64xf32>,
    %45 = arith.truncf %15 : vector<32x64xf32> to vector<32x64xbf16>
    %c0_16 = arith.constant 0 : index
    %c0_17 = arith.constant 0 : index
    %46 = vector.load %arg4[%c0_16, %c0_17] : memref<32x64xbf16, #tpu.memory_space<vmem>>, vector<32x64xbf16>
    tpu.vector_store %arg4[%c0_16, %c0_17], %45 {strides = array<i32>} : memref<32x64xbf16, #tpu.memory_space<vmem>>, vector<32x64xbf16>,
    return
  }
  func.func @transform_0(%arg0: i32) -> (i32, i32) {
    %c0_i32 = arith.constant 0 : i32
    %c0_i32_0 = arith.constant 0 : i32
    return %arg0, %c0_i32 : i32, i32
  }
  func.func @transform_1(%arg0: i32) -> (i32, i32) {
    %c0_i32 = arith.constant 0 : i32
    %c0_i32_0 = arith.constant 0 : i32
    %c0_i32_1 = arith.constant 0 : i32
    return %c0_i32, %c0_i32_0 : i32, i32
  }
  func.func @transform_2(%arg0: i32) -> (i32, i32) {
    %c0_i32 = arith.constant 0 : i32
    %c0_i32_0 = arith.constant 0 : i32
    %c0_i32_1 = arith.constant 0 : i32
    return %c0_i32, %c0_i32_0 : i32, i32
  }
  func.func @transform_3(%arg0: i32) -> (i32, i32) {
    %c0_i32 = arith.constant 0 : i32
    %c0_i32_0 = arith.constant 0 : i32
    return %arg0, %c0_i32 : i32, i32
  }
  func.func @transform_4(%arg0: i32) -> (i32, i32, i32) {
    %c0_i32 = arith.constant 0 : i32
    %c0_i32_0 = arith.constant 0 : i32
    %c0_i32_1 = arith.constant 0 : i32
    return %arg0, %c0_i32, %c0_i32_0 : i32, i32, i32
  }
}

</mosaic_0001>

<bundles_post_ra>
// kernel: mtst_forward.5
= control target key start
LH: loop header
LB: loop body
LE: loop exit
PB: predicated region body
PF: predicated region fallthrough
CT: control target
= control target key end

     0   :  { %vm69_vm0 = vcmask 523264   ;;  %s261_s0 = inlined_call_operand.vmem [shape: bf16[32,64], index: 0, kind: input, shape index: {}]   ;;  %s262_s1 = inlined_call_operand.vmem [shape: bf16[64,128], index: 1, kind: input, shape index: {}]   ;;  %s263_s2 = inlined_call_operand.vmem [shape: f32[1,128], index: 2, kind: input, shape index: {}]   ;;  %s264_s3 = inlined_call_operand.hbm [shape: f32[32,128], index: 3, kind: output, shape index: {}]  }
   0x1   :  { %v175_v0 = vld [vmem:[%s262_s1] sm:$0xff]   ;;  %v176_v1 = vld [vmem:[%s262_s1 + $0x8] sm:$0xff]   ;;  %v177_v2 = vld [vmem:[%s262_s1 + $0x10] sm:$0xff]  }
   0x2   :  { %160 = vmatprep.subr.bf16.mxu0 %v175_v0  ;;  %v179_v3 = vld [vmem:[%s261_s0] sm:$0xff]  }
   0x3   :  { %161 = vmatpush3.bf16.msra.mxu0 %v175_v0  ;;  %168 = vmatprep.mubr.msk.bf16.mxu0 %vm69_vm0, %v179_v3 }
   0x4   :  { %162 = vmatprep.subr.bf16.mxu0 %v176_v1 }
   0x5   :  { %8 = vsyncpa [#allocation3], 0  ;;  %v178_v4 = vld [vmem:[%s262_s1 + $0x18] sm:$0xff]   ;;  %v180_v5 = vld [vmem:[%s261_s0 + $0x8] sm:$0xff]   ;;  %s205_s26 = smov [#allocation2]  }
   0x6   :  { %v145_v6 = vld [vmem:[%s263_s2] ss:$0 sm:$0xff]  ;;  %s134_s27 = sshll.u32 %s205_s26, 4  ;;  %s135_s27 = int_to_ptr.vmem [resolvable:$true] %s134_s27 }
   0x7   :  { %163 = vmatpush3.bf16.msra.mxu0 %v176_v1  ;;  %s181_s0 = scalar_lea.vmem %s135_s27, 512  ;;  %p186_p1 = scmp.lt.s32.totalorder %s135_s27, %s135_s27 }
   0x8   :  { %164 = vmatprep.subr.bf16.mxu0 %v177_v2  ;;  %p182_p0 = scmp.ne.s32.totalorder %s135_s27, %s181_s0  ;;  %p187_p2 = scmp.lt.s32.totalorder %s181_s0, %s181_s0 }
   0xa   :  { %p188_p3 = por %p187_p2, %p186_p1 }
   0xb   :  { %165 = vmatpush3.bf16.msra.mxu0 %v177_v2 }
   0xc   :  { %166 = vmatprep.subr.bf16.mxu0 %v178_v4  ;;  %p189_p4 = pnand %p188_p3, %p182_p0 }
   0xf   :  { %167 = vmatpush3.bf16.msra.mxu0 %v178_v4 }
  0x12   :  { %169 = vmatmul.mubr.msk.bf16.vlgmr.msra.gmra.mrb[0].mxu0 %vm69_vm0, %v180_v5 }
  0xe5   :  { %v170_v7 = vpop.f32.mrb[0].mxu0 }
  0xe6   :  { %v119_v8 = vadd.f32 %v170_v7, %v145_v6  ;;  %v110_v9 = vpop.f32.mrb[1].mxu0 }
  0xe7   :  { %v111_v10 = vadd.f32 %v145_v6, %v110_v9  ;;  %v171_v11 = vpop.f32.mrb[2].mxu0 }
  0xe8   :  { %127 = vst [vmem:[#allocation2 + $0x10] sm:$0xff] %v119_v8  ;;  %v122_v12 = vadd.f32 %v171_v11, %v145_v6  ;;  %v113_v13 = vpop.f32.mrb[3].mxu0 }
  0xe9   :  { %125 = vst [vmem:[#allocation2] sm:$0xff] %v111_v10  ;;  %v114_v14 = vadd.f32 %v145_v6, %v113_v13 }
  0xea   :  { %128 = vst [vmem:[#allocation2 + $0x18] sm:$0xff] %v122_v12 }
  0xeb   :  { %126 = vst [vmem:[#allocation2 + $0x8] sm:$0xff] %v114_v14 }
  0xec   :  { %192 = shalt.err (!%p189_p4)
}
  0xed   :  { %s193_s28 = scalar_lea.hbm %s264_s3, 512 }
  0xee   :  { %p194_p5 = scmp.ne.s32.totalorder %s264_s3, %s193_s28  ;;  %p197_p6 = scmp.lt.u32.totalorder %s193_s28, %s264_s3 }
  0xf0   :  { %p199_p7 = pnand %p197_p6, %p194_p5 }
  0xf2   :  { %202 = shalt.err (!%p199_p7)
}
  0xf3   :  { %s206_s6 = smov 128   ;;  %s207_s7 = smov 8  }
  0xf4   :  { %140 = dma.vmem_to_hbm [thread:$0]  %s135_s27, 512, %s264_s3, [#allocation3], %s206_s6, %s206_s6, %s207_s7  }
  0xf5   :  { %203 = dma.done.wait [#allocation3], 512  }
  0xf6   :  { %204 = vsyncadd [#allocation3], 4294966784 }
  0xf7   :  { %144 = vsyncpa [#allocation3], 1 }

// kernel: mtst_forward.4
= control target key start
LH: loop header
LB: loop body
LE: loop exit
PB: predicated region body
PF: predicated region fallthrough
CT: control target
= control target key end

     0   :  { %vm86_vm0 = vcmask 785408   ;;  %vm249_vm4 = vcmask 519168   ;;  %vm197_vm6 = vcmask 523264   ;;  %s407_s1 = inlined_call_operand.vmem [shape: bf16[96,64], index: 1, kind: input, shape index: {}]   ;;  %s408_s0 = inlined_call_operand.vmem [shape: bf16[32,96], index: 0, kind: input, shape index: {}]   ;;  %s409_s2 = inlined_call_operand.vmem [shape: f32[1,64], index: 2, kind: input, shape index: {}]   ;;  %s410_s3 = inlined_call_operand.vmem [shape: bf16[32,64], index: 3, kind: output, shape index: {0}]   ;;  %s411_s4 = inlined_call_operand.vmem [shape: f32[1,8,64], index: 4, kind: output, shape index: {1}]  }
   0x1   :  { %v309_v0 = vld [vmem:[%s407_s1] sm:$0xff]   ;;  %v310_v1 = vld [vmem:[%s407_s1 + $0x8] sm:$0xff]   ;;  %v311_v2 = vld [vmem:[%s407_s1 + $0x10] sm:$0xff]  }
   0x2   :  { %293 = vmatprep.subr.bf16.mxu0 %v309_v0  ;;  %v315_v3 = vld [vmem:[%s408_s0] sm:$0xff]   ;;  %v312_v4 = vld [vmem:[%s407_s1 + $0x18] sm:$0xff]   ;;  %v314_v6 = vld [vmem:[%s407_s1 + $0x28] sm:$0xff]  }
   0x3   :  { %294 = vmatpush3.bf16.msra.mxu0 %v309_v0  ;;  %305 = vmatprep.mubr.msk.bf16.mxu0 %vm86_vm0, %v315_v3  ;;  %v313_v5 = vld [vmem:[%s407_s1 + $0x20] sm:$0xff]   ;;  %v316_v7 = vld [vmem:[%s408_s0 + $0x8] sm:$0xff]  }
   0x4   :  { %295 = vmatprep.subr.bf16.mxu0 %v310_v1  ;;  %v262_v8 = vld [vmem:[%s409_s2] ss:$0 sm:$0xff] }
   0x7   :  { %296 = vmatpush3.bf16.msra.mxu0 %v310_v1 }
   0x8   :  { %297 = vmatprep.subr.bf16.mxu0 %v311_v2 }
   0xb   :  { %298 = vmatpush3.bf16.msra.mxu0 %v311_v2  ;;  %v171_v2 = vlaneseq }
   0xc   :  { %299 = vmatprep.subr.bf16.mxu0 %v312_v4 }
   0xf   :  { %300 = vmatpush3.bf16.msra.mxu0 %v312_v4 }
  0x10   :  { %301 = vmatprep.subr.bf16.mxu0 %v313_v5 }
  0x13   :  { %302 = vmatpush3.bf16.msra.mxu0 %v313_v5 }
  0x14   :  { %303 = vmatprep.subr.bf16.mxu0 %v314_v6 }
  0x17   :  { %304 = vmatpush3.bf16.msra.mxu0 %v314_v6 }
  0x1a   :  { %306 = vmatmul.mubr.msk.bf16.vlgmr.msra.gmra.mrb[0].mxu0 %vm86_vm0, %v316_v7  ;;  %v172_v7 = vshrl.u32 %v171_v2, 7 }
  0x1c   :  { %vm229_vm7 = vcmp.eq.s32.totalorder %v172_v7, 1  ;;  %vm228_vm8 = vcmp.eq.s32.totalorder %v172_v7, 0 }
  0xed   :  { %v307_v9 = vpop.f32.mrb[0].mxu0 }
  0xee   :  { %v136_v10 = vadd.f32 %v307_v9, %v262_v8  ;;  %v127_v11 = vpop.f32.mrb[1].mxu0 }
  0xef   :  { %v128_v12 = vadd.f32 %v262_v8, %v127_v11  ;;  %v308_v13 = vpop.f32.mrb[2].mxu0 }
  0xf0   :  { %v150_v14 = vmul.f32 1.442695, %v136_v10  ;;  %v139_v15 = vadd.f32 %v308_v13, %v262_v8  ;;  %v130_v16 = vpop.f32.mrb[3].mxu0  ;;  %vm144_vm1 = vcmp.gt.f32.partialorder %v136_v10, 0.0 }
  0xf1   :  { %v146_v17 = vmul.f32 1.442695, %v128_v12  ;;  %v131_v18 = vadd.f32 %v262_v8, %v130_v16  ;;  %vm142_vm2 = vcmp.gt.f32.partialorder %v128_v12, 0.0 }
  0xf2   :  { %317 = vpow2.f32 %v150_v14  ;;  %v152_v19 = vmul.f32 1.442695, %v139_v15  ;;  %vm145_vm3 = vcmp.gt.f32.partialorder %v139_v15, 0.0 }
  0xf3   :  { %319 = vpow2.f32 %v146_v17  ;;  %v148_v20 = vmul.f32 1.442695, %v131_v18  ;;  %vm143_vm5 = vcmp.gt.f32.partialorder %v131_v18, 0.0 }
  0xf4   :  { %321 = vpow2.f32 %v152_v19 }
  0xf5   :  { %323 = vpow2.f32 %v148_v20 }
  0xfc   :  { %v318_v21 = vpop.eup %317 }
  0xfd   :  { %v320_v22 = vpop.eup %319  ;;  %v275_v23 = vadd.f32 -1.0, %v318_v21 }
  0xfe   :  { %v322_v24 = vpop.eup %321  ;;  %v273_v25 = vadd.f32 -1.0, %v320_v22 }
  0xff   :  { %v324_v26 = vpop.eup %323  ;;  %v160_v27 = vmul.f32 1.6732632, %v275_v23  ;;  %v276_v28 = vadd.f32 -1.0, %v322_v24 }
 0x100   :  { %v158_v29 = vmul.f32 1.6732632, %v273_v25  ;;  %v274_v30 = vadd.f32 -1.0, %v324_v26 }
 0x101   :  { %v164_v31 = vsel %vm144_vm1, %v136_v10, %v160_v27  ;;  %v161_v32 = vmul.f32 1.6732632, %v276_v28 }
 0x102   :  { %v168_v33 = vmul.f32 1.050701, %v164_v31  ;;  %v162_v34 = vsel %vm142_vm2, %v128_v12, %v158_v29  ;;  %v159_v35 = vmul.f32 1.6732632, %v274_v30 }
 0x103   :  { %v166_v36 = vmul.f32 1.050701, %v162_v34  ;;  %v165_v37 = vsel %vm145_vm3, %v139_v15, %v161_v32 }
 0x104   :  { %v283_v38 = vpack.c.bf16 %v168_v33, %v168_v33  ;;  %v169_v39 = vmul.f32 1.050701, %v165_v37  ;;  %v163_v41 = vsel %vm143_vm5, %v131_v18, %v159_v35  ;;  %v213_v45 = vmul.f32 %v168_v33, %v168_v33 }
 0x105   :  { %v281_v40 = vpack.c.bf16 %v166_v36, %v166_v36  ;;  %v211_v43 = vmul.f32 %v166_v36, %v166_v36  ;;  %v167_v44 = vmul.f32 1.050701, %v163_v41  ;;  %v198_v46 = vsel %vm197_vm6, %v166_v36, 0.0 }
 0x106   :  { %252 = vst.msk [vmem:[%s410_s3 + $0x8] sm:$0xf] %vm249_vm4, %v283_v38  ;;  %v284_v42 = vpack.c.bf16 %v169_v39, %v169_v39  ;;  %v201_v51 = vsel %vm197_vm6, %v168_v33, 0.0  ;;  %v214_v53 = vmul.f32 %v169_v39, %v169_v39  ;;  %v218_v57 = vsel %vm197_vm6, %v213_v45, 0.0 }
 0x107   :  { %250 = vst.msk [vmem:[%s410_s3] sm:$0xf] %vm249_vm4, %v281_v40  ;;  %v199_v47 = vsel %vm197_vm6, %v167_v44, 0.0  ;;  %v212_v48 = vmul.f32 %v167_v44, %v167_v44  ;;  %v282_v49 = vpack.c.bf16 %v167_v44, %v167_v44  ;;  %v215_v52 = vsel %vm197_vm6, %v211_v43, 0.0 }
 0x108   :  { %253 = vst.msk [vmem:[%s410_s3 + $0xc] sm:$0xf] %vm249_vm4, %v284_v42  ;;  %v200_v50 = vadd.f32 %v199_v47, %v198_v46  ;;  %v203_v58 = vsel %vm197_vm6, %v169_v39, 0.0  ;;  %v220_v61 = vsel %vm197_vm6, %v214_v53, 0.0 }
 0x109   :  { %v216_v54 = vsel %vm197_vm6, %v212_v48, 0.0  ;;  %251 = vst.msk [vmem:[%s410_s3 + $0x4] sm:$0xf] %vm249_vm4, %v282_v49 }
 0x10a   :  { %v202_v55 = vadd.f32 %v201_v51, %v200_v50  ;;  %v217_v56 = vadd.f32 %v216_v54, %v215_v52 }
 0x10c   :  { %v204_v59 = vadd.f32 %v203_v58, %v202_v55  ;;  %v219_v60 = vadd.f32 %v218_v57, %v217_v56 }
 0x10e   :  { %v205_v62 = vrot.slane %v204_v59, 4  ;;  %v221_v63 = vadd.f32 %v220_v61, %v219_v60 }
 0x110   :  { %v206_v0 = vadd.f32 %v205_v62, %v204_v59  ;;  %v222_v1 = vrot.slane %v221_v63, 4 }
 0x112   :  { %v207_v3 = vrot.slane %v206_v0, 2  ;;  %v223_v4 = vadd.f32 %v222_v1, %v221_v63 }
 0x114   :  { %v208_v5 = vadd.f32 %v207_v3, %v206_v0  ;;  %v224_v6 = vrot.slane %v223_v4, 2 }
 0x116   :  { %v225_v8 = vadd.f32 %v224_v6, %v223_v4  ;;  %v209_v9 = vrot.slane %v208_v5, 1 }
 0x118   :  { %v226_v10 = vrot.slane %v225_v8, 1  ;;  %v210_v12 = vadd.f32 %v209_v9, %v208_v5 }
 0x11a   :  { %v227_v11 = vadd.f32 %v226_v10, %v225_v8 }
 0x11c   :  { %v230_v13 = vsel %vm229_vm7, %v227_v11, 0.0 }
 0x11d   :  { %v231_v14 = vsel %vm228_vm8, %v210_v12, %v230_v13 }
 0x11e   :  { %232 = vst.msk [vmem:[%s411_s4] sm:$0xff] %vm197_vm6, %v231_v14 }

// kernel: mtst_forward.3
= control target key start
LH: loop header
LB: loop body
LE: loop exit
PB: predicated region body
PF: predicated region fallthrough
CT: control target
= control target key end

     0   :  { %12 = vsyncpa [#allocation3], 0  ;;  %s529_s0 = inlined_call_operand.vmem [shape: bf16[32,128], index: 0, kind: input, shape index: {}]   ;;  %s530_s1 = inlined_call_operand.vmem [shape: s8[32,128], index: 1, kind: input, shape index: {}]   ;;  %s531_s2 = inlined_call_operand.vmem [shape: f32[2], index: 2, kind: input, shape index: {}]   ;;  %s532_s3 = inlined_call_operand.vmem [shape: bf16[128,96], index: 3, kind: input, shape index: {}]   ;;  %s533_s4 = inlined_call_operand.vmem [shape: f32[1,96], index: 4, kind: input, shape index: {}]   ;;  %s534_s5 = inlined_call_operand.vmem [shape: bf16[32,96], index: 5, kind: output, shape index: {0}]   ;;  %s535_s6 = inlined_call_operand.vmem [shape: f32[1,8,96], index: 6, kind: output, shape index: {1}]  }
   0x1   :  { %s23_s23 = sshll.u32 %s531_s2, 4  ;;  %s24_s23 = int_to_ptr.vmem [resolvable:$true] %s23_s23 }
   0x2   :  { %s411_s24 = scalar_lea.vmem %s24_s23, 16  ;;  %p416_p1 = scmp.lt.s32.totalorder %s24_s23, %s24_s23 }
   0x3   :  { %p412_p0 = scmp.ne.s32.totalorder %s24_s23, %s411_s24  ;;  %p417_p2 = scmp.lt.s32.totalorder %s411_s24, %s411_s24 }
   0x5   :  { %p418_p3 = por %p417_p2, %p416_p1 }
   0x7   :  { %p419_p4 = pnand %p418_p3, %p412_p0 }
   0x9   :  { %422 = shalt.err (!%p419_p4)
}
   0xa   :  { %s425_s25 = smov [#allocation2]  }
   0xb   :  { %26 = dma.vmem_to_smem %s24_s23, 16, %s425_s25, [#allocation3]  }
   0xc   :  { %423 = dma.done.wait [#allocation3], 16  }
   0xd   :  { %424 = vsyncadd [#allocation3], 4294967280 }
   0xe   :  { %34 = sfence }
   0xf   :  { %v395_v0 = vld [vmem:[%s532_s3] sm:$0xff]   ;;  %v396_v1 = vld [vmem:[%s532_s3 + $0x8] sm:$0xff]   ;;  %v397_v2 = vld [vmem:[%s532_s3 + $0x10] sm:$0xff]   ;;  %s48_s11 = sld [smem:[#allocation2]]  ;;  %s332_s12 = sld [smem:[#allocation2 + $0x1]]  ;;  %v426_v6 = vmov 0  }
  0x10   :  { %373 = vmatprep.subr.bf16.mxu0 %v395_v0  ;;  %v398_v3 = vld [vmem:[%s532_s3 + $0x18] sm:$0xff]   ;;  %v38_v4 = vld [vmem:[%s530_s1] sm:$0xff]  ;;  %v362_v15 = vld [vmem:[%s529_s0 + $0x8] sm:$0xff]   ;;  %vm318_vm12 = vcmask 781312   ;;  %vm266_vm14 = vcmask 785408  }
  0x11   :  { %374 = vmatpush3.bf16.msra.mxu0 %v395_v0  ;;  %vm39_vm0 = vnez %v38_v4  ;;  %v355_v5 = vld [vmem:[%s529_s0] sm:$0xff]   ;;  %v360_v23 = vunpack.c.l.bf16 %v362_v15  ;;  %v400_v24 = vld [vmem:[%s532_s3 + $0x28] sm:$0xff]   ;;  %v361_v26 = vunpack.c.h.bf16 %v362_v15  ;;  %v401_v37 = vld [vmem:[%s532_s3 + $0x30] sm:$0xff]  }
  0x12   :  { %375 = vmatprep.subr.bf16.mxu0 %v396_v1  ;;  %v56_v7 = vsel %vm39_vm0, 16843009, %v426_v6  ;;  %v399_v12 = vld [vmem:[%s532_s3 + $0x20] sm:$0xff]   ;;  %v356_v13 = vunpack.c.l.bf16 %v355_v5  ;;  %v357_v14 = vunpack.c.h.bf16 %v355_v5  ;;  %v402_v45 = vld [vmem:[%s532_s3 + $0x38] sm:$0xff]  }
  0x13   :  { %v57_v8 = vunpack.c.0.s8 %v56_v7  ;;  %v58_v9 = vunpack.c.1.s8 %v56_v7  ;;  %v59_v10 = vunpack.c.2.s8 %v56_v7  ;;  %v60_v11 = vunpack.c.3.s8 %v56_v7  ;;  %v333_v49 = vld [vmem:[%s533_s4] ss:$0 sm:$0xff] }
  0x15   :  { %376 = vmatpush3.bf16.msra.mxu0 %v396_v1  ;;  %v61_v16 = vpack.c.b16 %v57_v8, %v57_v8  ;;  %v63_v17 = vpack.c.b16 %v58_v9, %v58_v9  ;;  %v65_v18 = vpack.c.b16 %v59_v10, %v59_v10  ;;  %v67_v19 = vpack.c.b16 %v60_v11, %v60_v11 }
  0x16   :  { %377 = vmatprep.subr.bf16.mxu0 %v397_v2  ;;  %v49_v20 = vstv %s48_s11  ;;  %v55_v25 = vstv %s332_s12 }
  0x17   :  { %v62_v21 = vpack.c.b8 %v61_v16, %v61_v16  ;;  %v64_v22 = vpack.c.b8 %v63_v17, %v63_v17  ;;  %v66_v27 = vpack.c.b8 %v65_v18, %v65_v18  ;;  %v68_v28 = vpack.c.b8 %v67_v19, %v67_v19 }
  0x18   :  { %v50_v29 = vadd.f32 %v356_v13, %v49_v20  ;;  %v51_v30 = vadd.f32 %v357_v14, %v49_v20  ;;  %v52_v43 = vadd.f32 %v360_v23, %v49_v20  ;;  %v53_v44 = vadd.f32 %v361_v26, %v49_v20 }
  0x19   :  { %378 = vmatpush3.bf16.msra.mxu0 %v397_v2  ;;  %vm69_vm1 = vnez %v62_v21  ;;  %vm70_vm2 = vnez %v64_v22  ;;  %vm71_vm3 = vnez %v66_v27  ;;  %vm72_vm4 = vnez %v68_v28 }
  0x1a   :  { %379 = vmatprep.subr.bf16.mxu0 %v398_v3  ;;  %v73_v31 = vsel %vm69_vm1, 16843009, %v426_v6  ;;  %v74_v32 = vsel %vm70_vm2, 16843009, %v426_v6  ;;  %v75_v35 = vsel %vm71_vm3, 16843009, %v426_v6 }
  0x1b   :  { %v77_v33 = vunpack.c.0.s8 %v73_v31  ;;  %v78_v34 = vunpack.c.0.s8 %v74_v32  ;;  %v76_v36 = vsel %vm72_vm4, 16843009, %v426_v6  ;;  %v79_v38 = vunpack.c.0.s8 %v75_v35 }
  0x1c   :  { %v80_v39 = vunpack.c.0.s8 %v76_v36 }
  0x1d   :  { %380 = vmatpush3.bf16.msra.mxu0 %v398_v3  ;;  %vm81_vm5 = vcmp.ne.s32.totalorder %v77_v33, 0  ;;  %vm82_vm6 = vcmp.ne.s32.totalorder %v78_v34, 0  ;;  %vm83_vm7 = vcmp.ne.s32.totalorder %v79_v38, 0 }
  0x1e   :  { %381 = vmatprep.subr.bf16.mxu0 %v399_v12  ;;  %v85_v40 = vsel %vm81_vm5, %v50_v29, %v55_v25  ;;  %v86_v41 = vsel %vm82_vm6, %v51_v30, %v55_v25  ;;  %vm84_vm8 = vcmp.ne.s32.totalorder %v80_v39, 0  ;;  %v87_v46 = vsel %vm83_vm7, %v52_v43, %v55_v25 }
  0x1f   :  { %v89_v42 = vpack.c.bf16 %v86_v41, %v85_v40  ;;  %v88_v47 = vsel %vm84_vm8, %v53_v44, %v55_v25  ;;  %v240_v43 = vlaneseq }
  0x20   :  { %v90_v48 = vpack.c.bf16 %v88_v47, %v87_v46 }
  0x21   :  { %382 = vmatpush3.bf16.msra.mxu0 %v399_v12  ;;  %389 = vmatprep.mubr.bf16.mxu0 %v89_v42 }
  0x22   :  { %383 = vmatprep.subr.bf16.mxu0 %v400_v24 }
  0x25   :  { %384 = vmatpush3.bf16.msra.mxu0 %v400_v24 }
  0x26   :  { %385 = vmatprep.subr.bf16.mxu0 %v401_v37 }
  0x29   :  { %386 = vmatpush3.bf16.msra.mxu0 %v401_v37 }
  0x2a   :  { %387 = vmatprep.subr.bf16.mxu0 %v402_v45 }
  0x2d   :  { %388 = vmatpush3.bf16.msra.mxu0 %v402_v45 }
  0x30   :  { %390 = vmatmul.mubr.bf16.vlgmr.msra.gmra.mrb[0].mxu0 %v90_v48  ;;  %v241_v48 = vshrl.u32 %v240_v43, 7 }
  0x32   :  { %vm298_vm15 = vcmp.eq.s32.totalorder %v241_v48, 1  ;;  %vm297_vm0 = vcmp.eq.s32.totalorder %v241_v48, 0 }
 0x103   :  { %v391_v50 = vpop.f32.mrb[0].mxu0 }
 0x104   :  { %v205_v51 = vadd.f32 %v391_v50, %v333_v49  ;;  %v196_v52 = vpop.f32.mrb[1].mxu0 }
 0x105   :  { %v197_v53 = vadd.f32 %v333_v49, %v196_v52  ;;  %v392_v54 = vpop.f32.mrb[2].mxu0 }
 0x106   :  { %v219_v55 = vmul.f32 1.442695, %v205_v51  ;;  %v208_v56 = vadd.f32 %v392_v54, %v333_v49  ;;  %v199_v57 = vpop.f32.mrb[3].mxu0  ;;  %vm213_vm9 = vcmp.gt.f32.partialorder %v205_v51, 0.0 }
 0x107   :  { %v215_v58 = vmul.f32 1.442695, %v197_v53  ;;  %v200_v59 = vadd.f32 %v333_v49, %v199_v57  ;;  %vm211_vm10 = vcmp.gt.f32.partialorder %v197_v53, 0.0 }
 0x108   :  { %403 = vpow2.f32 %v219_v55  ;;  %v221_v60 = vmul.f32 1.442695, %v208_v56  ;;  %vm214_vm11 = vcmp.gt.f32.partialorder %v208_v56, 0.0 }
 0x109   :  { %405 = vpow2.f32 %v215_v58  ;;  %v217_v61 = vmul.f32 1.442695, %v200_v59  ;;  %vm212_vm13 = vcmp.gt.f32.partialorder %v200_v59, 0.0 }
 0x10a   :  { %407 = vpow2.f32 %v221_v60 }
 0x10b   :  { %409 = vpow2.f32 %v217_v61 }
 0x112   :  { %v404_v62 = vpop.eup %403 }
 0x113   :  { %v406_v63 = vpop.eup %405  ;;  %v344_v0 = vadd.f32 -1.0, %v404_v62 }
 0x114   :  { %v408_v1 = vpop.eup %407  ;;  %v342_v2 = vadd.f32 -1.0, %v406_v63 }
 0x115   :  { %v410_v3 = vpop.eup %409  ;;  %v229_v4 = vmul.f32 1.6732632, %v344_v0  ;;  %v345_v5 = vadd.f32 -1.0, %v408_v1 }
 0x116   :  { %v227_v6 = vmul.f32 1.6732632, %v342_v2  ;;  %v343_v7 = vadd.f32 -1.0, %v410_v3 }
 0x117   :  { %v233_v8 = vsel %vm213_vm9, %v205_v51, %v229_v4  ;;  %v230_v9 = vmul.f32 1.6732632, %v345_v5 }
 0x118   :  { %v237_v10 = vmul.f32 1.050701, %v233_v8  ;;  %v231_v11 = vsel %vm211_vm10, %v197_v53, %v227_v6  ;;  %v228_v12 = vmul.f32 1.6732632, %v343_v7 }
 0x119   :  { %v235_v13 = vmul.f32 1.050701, %v231_v11  ;;  %v234_v14 = vsel %vm214_vm11, %v208_v56, %v230_v9 }
 0x11a   :  { %v352_v15 = vpack.c.bf16 %v237_v10, %v237_v10  ;;  %v238_v16 = vmul.f32 1.050701, %v234_v14  ;;  %v232_v18 = vsel %vm212_vm13, %v200_v59, %v228_v12  ;;  %v282_v22 = vmul.f32 %v237_v10, %v237_v10 }
 0x11b   :  { %v350_v17 = vpack.c.bf16 %v235_v13, %v235_v13  ;;  %v280_v20 = vmul.f32 %v235_v13, %v235_v13  ;;  %v236_v21 = vmul.f32 1.050701, %v232_v18  ;;  %v267_v23 = vsel %vm266_vm14, %v235_v13, 0.0 }
 0x11c   :  { %321 = vst.msk [vmem:[%s534_s5 + $0x8] sm:$0xf] %vm318_vm12, %v352_v15  ;;  %v353_v19 = vpack.c.bf16 %v238_v16, %v238_v16  ;;  %v270_v28 = vsel %vm266_vm14, %v237_v10, 0.0  ;;  %v283_v30 = vmul.f32 %v238_v16, %v238_v16  ;;  %v287_v34 = vsel %vm266_vm14, %v282_v22, 0.0 }
 0x11d   :  { %319 = vst.msk [vmem:[%s534_s5] sm:$0xf] %vm318_vm12, %v350_v17  ;;  %v268_v24 = vsel %vm266_vm14, %v236_v21, 0.0  ;;  %v281_v25 = vmul.f32 %v236_v21, %v236_v21  ;;  %v351_v26 = vpack.c.bf16 %v236_v21, %v236_v21  ;;  %v284_v29 = vsel %vm266_vm14, %v280_v20, 0.0 }
 0x11e   :  { %322 = vst.msk [vmem:[%s534_s5 + $0xc] sm:$0xf] %vm318_vm12, %v353_v19  ;;  %v269_v27 = vadd.f32 %v268_v24, %v267_v23  ;;  %v272_v35 = vsel %vm266_vm14, %v238_v16, 0.0  ;;  %v289_v38 = vsel %vm266_vm14, %v283_v30, 0.0 }
 0x11f   :  { %v285_v31 = vsel %vm266_vm14, %v281_v25, 0.0  ;;  %320 = vst.msk [vmem:[%s534_s5 + $0x4] sm:$0xf] %vm318_vm12, %v351_v26 }
 0x120   :  { %v271_v32 = vadd.f32 %v270_v28, %v269_v27  ;;  %v286_v33 = vadd.f32 %v285_v31, %v284_v29 }
 0x122   :  { %v273_v36 = vadd.f32 %v272_v35, %v271_v32  ;;  %v288_v37 = vadd.f32 %v287_v34, %v286_v33 }
 0x124   :  { %v274_v39 = vrot.slane %v273_v36, 4  ;;  %v290_v40 = vadd.f32 %v289_v38, %v288_v37 }
 0x126   :  { %v275_v41 = vadd.f32 %v274_v39, %v273_v36  ;;  %v291_v42 = vrot.slane %v290_v40, 4 }
 0x128   :  { %v276_v44 = vrot.slane %v275_v41, 2  ;;  %v292_v45 = vadd.f32 %v291_v42, %v290_v40 }
 0x12a   :  { %v277_v46 = vadd.f32 %v276_v44, %v275_v41  ;;  %v293_v47 = vrot.slane %v292_v45, 2 }
 0x12c   :  { %v294_v49 = vadd.f32 %v293_v47, %v292_v45  ;;  %v278_v50 = vrot.slane %v277_v46, 1 }
 0x12e   :  { %v295_v51 = vrot.slane %v294_v49, 1  ;;  %v279_v53 = vadd.f32 %v278_v50, %v277_v46 }
 0x130   :  { %v296_v52 = vadd.f32 %v295_v51, %v294_v49 }
 0x132   :  { %v299_v54 = vsel %vm298_vm15, %v296_v52, 0.0 }
 0x133   :  { %v300_v55 = vsel %vm297_vm0, %v279_v53, %v299_v54 }
 0x134   :  { %301 = vst.msk [vmem:[%s535_s6] sm:$0xff] %vm266_vm14, %v300_v55 }
 0x135   :  { %331 = vsyncpa [#allocation3], 1 }

</bundles_post_ra>
